<compile_context>
chip_gen: v7x
topology: tpu7x:2x2x1
jax: 0.10.0
libtpu: 0.0.40
codegen_flags: <defaults>
</compile_context>

<pallas_src>
import functools

import jax
import jax.numpy as jnp
from jax import lax
from jax.experimental import pallas as pl
from jax.experimental.pallas import tpu as pltpu

_LANES = 128
_SUBLANES = 8


def _round_up(x, m):
    return ((x + m - 1) // m) * m


def _dice_partial_kernel(x_ref, t_ref, o_inter_ref, o_s_ref,
                         inter_acc, s_acc, *, rows_in_last, needs_row_mask):
    j = pl.program_id(1)                 # row-tile index (reduction axis)
    n_j = pl.num_programs(1)

    @pl.when(j == 0)
    def _():
        inter_acc[...] = jnp.zeros_like(inter_acc)
        s_acc[...] = jnp.zeros_like(s_acc)

    x = x_ref[0].astype(jnp.float32)     # (tile_r, 128): native dtype, VPU upcast
    t = t_ref[0].astype(jnp.float32)

    def accumulate(xv, tv):
        prod = xv * tv
        ssum = xv + tv
        # Fold the tile into the (8, 128) running partials with pure VPU adds;
        # the cross-lane/sublane reduce is deferred to the wrapper epilogue.
        inter_acc[...] += jnp.sum(prod.reshape(-1, _SUBLANES, _LANES), axis=0)
        s_acc[...] += jnp.sum(ssum.reshape(-1, _SUBLANES, _LANES), axis=0)

    if needs_row_mask:
        # Only the last row-tile overhangs the array; interior tiles take the
        # unmasked fast path (no iota / compare / where work).
        @pl.when(j != n_j - 1)
        def _():
            accumulate(x, t)

        @pl.when(j == n_j - 1)
        def _():
            row = lax.broadcasted_iota(jnp.int32, x.shape, 0)
            valid = row < rows_in_last          # static bound
            accumulate(jnp.where(valid, x, 0.0), jnp.where(valid, t, 0.0))
    else:
        accumulate(x, t)

    @pl.when(j == n_j - 1)
    def _():
        o_inter_ref[0] = inter_acc[...]
        o_s_ref[0] = s_acc[...]


@jax.jit
def binary_dice_loss(inputs, targets):
    """Pallas TPU implementation of BinaryDiceLoss.forward -> scalar f32 loss."""
    N = targets.shape[0]
    x2 = inputs.reshape(N, -1)           # native dtype, no wrapper-side f32 cast
    t2 = targets.reshape(N, -1)
    D = x2.shape[1]

    # View each sample as R rows of 128 lanes (sublane-filled blocks).  Keep at
    # least 8 rows so blocks stay (8, 128)-aligned.  When D is a multiple of
    # 128 (common for flattened feature maps) the reshape is a free view;
    # otherwise a single zero-pad pass is paid (zeros add nothing to either
    # the intersection or the sum, so numerics are unchanged).
    R = max(pl.cdiv(D, _LANES), _SUBLANES)
    D_pad = R * _LANES
    if D_pad != D:
        x2 = jnp.pad(x2, ((0, 0), (0, D_pad - D)))
        t2 = jnp.pad(t2, ((0, 0), (0, D_pad - D)))
    x3 = x2.reshape(N, R, _LANES)
    t3 = t2.reshape(N, R, _LANES)

    # Dtype-aware tile sizing: 8 MiB budget for the double-buffered input
    # blocks (2 inputs x 2 pipeline buffers), capped so there are >= ~4 row
    # tiles per sample for DMA/compute overlap.  Independent of N, so large
    # batches never exceed the scoped VMEM limit (works on v5e/v6e/v7x).
    itemsize = max(x3.dtype.itemsize, t3.dtype.itemsize)
    budget = 8 * 1024 * 1024
    tile_r = budget // (2 * 2 * _LANES * itemsize)
    tile_r = min(tile_r, _round_up(pl.cdiv(R, 4), _SUBLANES))
    tile_r = max(_SUBLANES, (tile_r // _SUBLANES) * _SUBLANES)
    tile_r = min(tile_r, _round_up(R, _SUBLANES))

    n_row_tiles = pl.cdiv(R, tile_r)
    rows_in_last = R - (n_row_tiles - 1) * tile_r
    needs_row_mask = rows_in_last != tile_r     # static

    kernel = functools.partial(
        _dice_partial_kernel,
        rows_in_last=rows_in_last,
        needs_row_mask=needs_row_mask,
    )

    out_inter, out_s = pl.pallas_call(
        kernel,
        out_shape=(
            jax.ShapeDtypeStruct((N, _SUBLANES, _LANES), jnp.float32),
            jax.ShapeDtypeStruct((N, _SUBLANES, _LANES), jnp.float32),
        ),
        grid_spec=pltpu.PrefetchScalarGridSpec(
            num_scalar_prefetch=0,
            grid=(N, n_row_tiles),
            in_specs=[
                pl.BlockSpec((1, tile_r, _LANES), lambda i, j: (i, j, 0)),
                pl.BlockSpec((1, tile_r, _LANES), lambda i, j: (i, j, 0)),
            ],
            out_specs=(
                pl.BlockSpec((1, _SUBLANES, _LANES), lambda i, j: (i, 0, 0)),
                pl.BlockSpec((1, _SUBLANES, _LANES), lambda i, j: (i, 0, 0)),
            ),
            scratch_shapes=[
                pltpu.VMEM((_SUBLANES, _LANES), jnp.float32),
                pltpu.VMEM((_SUBLANES, _LANES), jnp.float32),
            ],
        ),
        compiler_params=pltpu.CompilerParams(
            # Sample axis is the parallel one: shards across the two TCs on
            # v7x, runs serially with no extra overhead on 1-TC v5e/v6e.
            dimension_semantics=("parallel", "arbitrary"),
            vmem_limit_bytes=32 * 1024 * 1024,
        ),
    )(x3, t3)

    # Tiny epilogue (N x 1024 partials): single cross-lane reduce + dice.
    smooth = jnp.float32(1.0)
    inter = jnp.sum(out_inter, axis=(1, 2))     # (N,)
    s = jnp.sum(out_s, axis=(1, 2))             # (N,)
    dice = (2.0 * inter + smooth) / (s + smooth)
    return (jnp.float32(1.0) - jnp.sum(dice) / N).astype(jnp.float32)


def _reference(inputs, targets):
    N = targets.shape[0]
    smooth = 1.0
    xf = inputs.reshape(N, -1).astype(jnp.float32)
    tf = targets.reshape(N, -1).astype(jnp.float32)
    inter = (xf * tf).sum(1)
    dice = (2.0 * inter + smooth) / (xf.sum(1) + tf.sum(1) + smooth)
    return 1.0 - dice.sum() / N


if __name__ == "__main__":
    key = jax.random.PRNGKey(0)
    k1, k2, k3, k4, k5, k6 = jax.random.split(key, 6)

    # Case 1: NCHW sigmoid probabilities + binary mask, D = 1024 (free 3-D view).
    x1 = jax.nn.sigmoid(jax.random.normal(k1, (2, 4, 16, 16), dtype=jnp.float32))
    y1 = (jax.random.uniform(k2, (2, 4, 16, 16)) > 0.5).astype(jnp.float32)
    loss1 = jax.block_until_ready(binary_dice_loss(x1, y1))
    ref1 = _reference(x1, y1)
    assert jnp.allclose(loss1, ref1, rtol=1e-5, atol=1e-5), (loss1, ref1)

    # Case 2: D = 1152 -> R = 9 rows, two row-tiles; exercises the pl.when-gated
    # mask on the last (overhanging) tile only.
    x2 = jax.nn.sigmoid(jax.random.normal(k3, (2, 4, 18, 16), dtype=jnp.float32))
    y2 = (jax.random.uniform(k4, (2, 4, 18, 16)) > 0.5).astype(jnp.float32)
    loss2 = jax.block_until_ready(binary_dice_loss(x2, y2))
    ref2 = _reference(x2, y2)
    assert jnp.allclose(loss2, ref2, rtol=1e-5, atol=1e-5), (loss2, ref2)

    # Case 3: ragged D = 429 (not a multiple of 128) -> wrapper zero-pad path.
    x3 = jax.nn.sigmoid(jax.random.normal(k5, (2, 3, 11, 13), dtype=jnp.float32))
    y3 = (jax.random.uniform(k6, (2, 3, 11, 13)) > 0.5).astype(jnp.float32)
    loss3 = jax.block_until_ready(binary_dice_loss(x3, y3))
    ref3 = _reference(x3, y3)
    assert jnp.allclose(loss3, ref3, rtol=1e-5, atol=1e-5), (loss3, ref3)

    # Case 4: bf16 inputs streamed in native dtype (upcast on the VPU in-kernel).
    x4 = x1.astype(jnp.bfloat16)
    loss4 = jax.block_until_ready(binary_dice_loss(x4, y1))
    ref4 = _reference(x4, y1)
    assert jnp.allclose(loss4, ref4, rtol=1e-5, atol=1e-5), (loss4, ref4)

    print("KERNEL_OK")
</pallas_src>

<mosaic_0001>
module attributes {stable_mosaic.version = 11 : i64} {
  func.func @_dice_partial_kernel(%arg0: i32, %arg1: i32, %arg2: memref<1x8x128xf32, #tpu.memory_space<vmem>>, %arg3: memref<1x8x128xf32, #tpu.memory_space<vmem>>, %arg4: memref<1x8x128xf32, #tpu.memory_space<vmem>>, %arg5: memref<1x8x128xf32, #tpu.memory_space<vmem>>, %arg6: memref<8x128xf32, #tpu.memory_space<vmem>>, %arg7: memref<8x128xf32, #tpu.memory_space<vmem>>) attributes {dimension_semantics = [#tpu.dimension_semantics<parallel>, #tpu.dimension_semantics<arbitrary>], iteration_bounds = array<i64: 2, 1>, scalar_prefetch = 0 : i64, scratch_operands = 2 : i64, tpu.core_type = #tpu.core_type<tc>, window_params = [{transform_indices = @transform_0, window_bounds = array<i64: 1, 8, 128>}, {transform_indices = @transform_1, window_bounds = array<i64: 1, 8, 128>}, {transform_indices = @transform_2, window_bounds = array<i64: 1, 8, 128>}, {transform_indices = @transform_3, window_bounds = array<i64: 1, 8, 128>}]} {
    %c0_i32 = arith.constant 0 : i32
    %0 = arith.cmpi eq, %arg1, %c0_i32 : i32
    %1 = arith.extui %0 : i1 to i32
    %c0_i32_0 = arith.constant 0 : i32
    %2 = arith.cmpi ne, %1, %c0_i32_0 : i32
    scf.if %2 {
      %cst_17 = arith.constant 0.000000e+00 : f32
      %22 = vector.broadcast %cst_17 : f32 to vector<8x128xf32>
      %c0_18 = arith.constant 0 : index
      %c0_19 = arith.constant 0 : index
      %23 = vector.load %arg6[%c0_18, %c0_19] : memref<8x128xf32, #tpu.memory_space<vmem>>, vector<8x128xf32>
      tpu.vector_store %arg6[%c0_18, %c0_19], %22 {strides = array<i32>} : memref<8x128xf32, #tpu.memory_space<vmem>>, vector<8x128xf32>,
      %cst_20 = arith.constant 0.000000e+00 : f32
      %24 = vector.broadcast %cst_20 : f32 to vector<8x128xf32>
      %c0_21 = arith.constant 0 : index
      %c0_22 = arith.constant 0 : index
      %25 = vector.load %arg7[%c0_21, %c0_22] : memref<8x128xf32, #tpu.memory_space<vmem>>, vector<8x128xf32>
      tpu.vector_store %arg7[%c0_21, %c0_22], %24 {strides = array<i32>} : memref<8x128xf32, #tpu.memory_space<vmem>>, vector<8x128xf32>,
    } else {
    }
    %c0 = arith.constant 0 : index
    %c0_1 = arith.constant 0 : index
    %c0_2 = arith.constant 0 : index
    %3 = vector.load %arg2[%c0, %c0_1, %c0_2] : memref<1x8x128xf32, #tpu.memory_space<vmem>>, vector<1x8x128xf32>
    %4 = vector.shape_cast %3 : vector<1x8x128xf32> to vector<8x128xf32>
    %c0_3 = arith.constant 0 : index
    %c0_4 = arith.constant 0 : index
    %c0_5 = arith.constant 0 : index
    %5 = vector.load %arg3[%c0_3, %c0_4, %c0_5] : memref<1x8x128xf32, #tpu.memory_space<vmem>>, vector<1x8x128xf32>
    %6 = vector.shape_cast %5 : vector<1x8x128xf32> to vector<8x128xf32>
    %7 = arith.mulf %4, %6 : vector<8x128xf32>
    %8 = arith.addf %4, %6 : vector<8x128xf32>
    %c0_6 = arith.constant 0 : index
    %c0_7 = arith.constant 0 : index
    %9 = vector.load %arg6[%c0_6, %c0_7] : memref<8x128xf32, #tpu.memory_space<vmem>>, vector<8x128xf32>
    %10 = vector.shape_cast %7 : vector<8x128xf32> to vector<1x8x128xf32>
    %cst = arith.constant dense<0.000000e+00> : vector<8x128xf32>
    %11 = vector.multi_reduction <add>, %10, %cst [0] : vector<1x8x128xf32> to vector<8x128xf32>
    %12 = arith.addf %9, %11 : vector<8x128xf32>
    %c0_8 = arith.constant 0 : index
    %c0_9 = arith.constant 0 : index
    %13 = vector.load %arg6[%c0_8, %c0_9] : memref<8x128xf32, #tpu.memory_space<vmem>>, vector<8x128xf32>
    tpu.vector_store %arg6[%c0_8, %c0_9], %12 {strides = array<i32>} : memref<8x128xf32, #tpu.memory_space<vmem>>, vector<8x128xf32>,
    %c0_10 = arith.constant 0 : index
    %c0_11 = arith.constant 0 : index
    %14 = vector.load %arg7[%c0_10, %c0_11] : memref<8x128xf32, #tpu.memory_space<vmem>>, vector<8x128xf32>
    %15 = vector.shape_cast %8 : vector<8x128xf32> to vector<1x8x128xf32>
    %cst_12 = arith.constant dense<0.000000e+00> : vector<8x128xf32>
    %16 = vector.multi_reduction <add>, %15, %cst_12 [0] : vector<1x8x128xf32> to vector<8x128xf32>
    %17 = arith.addf %14, %16 : vector<8x128xf32>
    %c0_13 = arith.constant 0 : index
    %c0_14 = arith.constant 0 : index
    %18 = vector.load %arg7[%c0_13, %c0_14] : memref<8x128xf32, #tpu.memory_space<vmem>>, vector<8x128xf32>
    tpu.vector_store %arg7[%c0_13, %c0_14], %17 {strides = array<i32>} : memref<8x128xf32, #tpu.memory_space<vmem>>, vector<8x128xf32>,
    %c0_i32_15 = arith.constant 0 : i32
    %19 = arith.cmpi eq, %arg1, %c0_i32_15 : i32
    %20 = arith.extui %19 : i1 to i32
    %c0_i32_16 = arith.constant 0 : i32
    %21 = arith.cmpi ne, %20, %c0_i32_16 : i32
    scf.if %21 {
      %c0_17 = arith.constant 0 : index
      %c0_18 = arith.constant 0 : index
      %22 = vector.load %arg6[%c0_17, %c0_18] : memref<8x128xf32, #tpu.memory_space<vmem>>, vector<8x128xf32>
      %c0_19 = arith.constant 0 : index
      %c0_20 = arith.constant 0 : index
      %c0_21 = arith.constant 0 : index
      %23 = vector.load %arg4[%c0_19, %c0_20, %c0_21] : memref<1x8x128xf32, #tpu.memory_space<vmem>>, vector<1x8x128xf32>
      %24 = vector.shape_cast %23 : vector<1x8x128xf32> to vector<8x128xf32>
      %25 = vector.shape_cast %22 : vector<8x128xf32> to vector<1x8x128xf32>
      tpu.vector_store %arg4[%c0_19, %c0_20, %c0_21], %25 {strides = array<i32>} : memref<1x8x128xf32, #tpu.memory_space<vmem>>, vector<1x8x128xf32>,
      %c0_22 = arith.constant 0 : index
      %c0_23 = arith.constant 0 : index
      %26 = vector.load %arg7[%c0_22, %c0_23] : memref<8x128xf32, #tpu.memory_space<vmem>>, vector<8x128xf32>
      %c0_24 = arith.constant 0 : index
      %c0_25 = arith.constant 0 : index
      %c0_26 = arith.constant 0 : index
      %27 = vector.load %arg5[%c0_24, %c0_25, %c0_26] : memref<1x8x128xf32, #tpu.memory_space<vmem>>, vector<1x8x128xf32>
      %28 = vector.shape_cast %27 : vector<1x8x128xf32> to vector<8x128xf32>
      %29 = vector.shape_cast %26 : vector<8x128xf32> to vector<1x8x128xf32>
      tpu.vector_store %arg5[%c0_24, %c0_25, %c0_26], %29 {strides = array<i32>} : memref<1x8x128xf32, #tpu.memory_space<vmem>>, vector<1x8x128xf32>,
    } else {
    }
    return
  }
  func.func @transform_0(%arg0: i32, %arg1: i32) -> (i32, i32, i32) {
    %c0_i32 = arith.constant 0 : i32
    %c0_i32_0 = arith.constant 0 : i32
    return %arg0, %arg1, %c0_i32 : i32, i32, i32
  }
  func.func @transform_1(%arg0: i32, %arg1: i32) -> (i32, i32, i32) {
    %c0_i32 = arith.constant 0 : i32
    %c0_i32_0 = arith.constant 0 : i32
    return %arg0, %arg1, %c0_i32 : i32, i32, i32
  }
  func.func @transform_2(%arg0: i32, %arg1: i32) -> (i32, i32, i32) {
    %c0_i32 = arith.constant 0 : i32
    %c0_i32_0 = arith.constant 0 : i32
    %c0_i32_1 = arith.constant 0 : i32
    return %arg0, %c0_i32, %c0_i32_0 : i32, i32, i32
  }
  func.func @transform_3(%arg0: i32, %arg1: i32) -> (i32, i32, i32) {
    %c0_i32 = arith.constant 0 : i32
    %c0_i32_0 = arith.constant 0 : i32
    %c0_i32_1 = arith.constant 0 : i32
    return %arg0, %c0_i32, %c0_i32_0 : i32, i32, i32
  }
}

</mosaic_0001>

<bundles_post_ra>
// kernel: binary_dice_loss.1
= control target key start
LH: loop header
LB: loop body
LE: loop exit
PB: predicated region body
PF: predicated region fallthrough
CT: control target
= control target key end

     0   :  { %s442_s12 = smov 0   ;;  %s444_s13 = smov 0   ;;  %s469_s0 = inlined_call_operand.vmem [shape: f32[2,8,128], index: 0, kind: input, shape index: {}]   ;;  %s470_s1 = inlined_call_operand.vmem [shape: f32[2,8,128], index: 1, kind: input, shape index: {}]   ;;  %s471_s2 = inlined_call_operand.vmem [shape: f32[2,8,128], index: 2, kind: output, shape index: {0}]   ;;  %s472_s3 = inlined_call_operand.vmem [shape: f32[2,8,128], index: 3, kind: output, shape index: {1}]  }
   0x1   :  { %s446_s14 = smov 0  }
   0x2 LB: > { %s26_s15 = sadd.s32 1, %s416_s13  ;;  %p367_p0 = scmp.ge.s32.totalorder %s420_s14, 1  ;;  %s420_s14 = sphi %s446_s14, %s14_s14   ;;  %s416_s13 = sphi %s444_s13, %s474_s13   ;;  %s412_s12 = sphi %s442_s12, %s473_s12  }
   0x3   : > { %p28_p1 = scmp.ge.s32.totalorder %s26_s15, 2  ;;  %p170_p2 = scmp.lt.s32.totalorder %s420_s14, 3 }
   0x5   : > { %s476_s15 = smov (%p28_p1, %s26_s15), 0  ;;  %p171_p3 = pnand %p367_p0, %p170_p2 }
   0x6   : > { %p206_p4 = scmp.lt.s32.totalorder (!%p171_p3), %s412_s12, 1 }
   0x7   : > { %174 = sbr.rel (%p171_p3) target bundleno = 22 (0x16), region = 28 }
   0xe   : > { %s478_s12 = smov (!%p206_p4, %s412_s12), 1 }
   0xf   : > { %s368_s16 = sshll.u32 %s478_s12, 3 }
  0x10   : > { %s212_s19 = scalar_lea.vmem %s469_s0, %s368_s16  ;;  %s219_s22 = scalar_lea.vmem %s470_s1, %s368_s16 }
  0x11   : > { %s223_s25 = scalar_lea.vmem %s471_s2, %s368_s16  ;;  %v234_v0 = vld [vmem:[%s212_s19] sm:$0xff]  ;;  %s227_s28 = scalar_lea.vmem %s472_s3, %s368_s16 }
  0x12   : > { %v235_v1 = vld [vmem:[%s219_s22] sm:$0xff] }
  0x13   : > { %v236_v2 = vmul.f32 %v235_v1, %v234_v0  ;;  %v237_v3 = vadd.f32 %v235_v1, %v234_v0 }
  0x15   : > { %250 = vst [vmem:[%s223_s25] sm:$0xff] %v236_v2  ;;  %252 = vst [vmem:[%s227_s28] sm:$0xff] %v237_v3 }
  0x16 PF: > { %s14_s14 = sadd.s32 1, %s420_s14   ;;  %s473_s12 = smov %s416_s13 }
  0x17   : > { %p11_p5 = scmp.ge.s32.totalorder %s14_s14, 4   ;;  %s474_s13 = smov %s476_s15 }
  0x19   :  { %13 = sbr.rel (!%p11_p5) target bundleno = 2 (0x2), region = 81 }

</bundles_post_ra>
